<compile_context>
chip_gen: v7x
topology: tpu7x:2x2x1
jax: 0.10.0
libtpu: 0.0.40
codegen_flags: <defaults>
</compile_context>

<pallas_src>
import math
import functools
import numpy as np

import jax
import jax.numpy as jnp
from jax.experimental import pallas as pl
from jax.experimental.pallas import tpu as pltpu

_TAU = math.tau
_PI = math.pi
_HALF_PI = 0.5 * math.pi

_SUB = 8      # sublane rows per pixel slab (full vreg sublane occupancy)
_LANE = 128   # lane quantum

# Abramowitz & Stegun 4.4.49 degree-9 polynomial for atan(a), 0 <= a <= 1
# (|err| <= 1e-5 rad — far below any colour-bin width).
_A1 = 0.9998660
_A3 = -0.3302995
_A5 = 0.1801410
_A7 = -0.0851330
_A9 = 0.0208351

_MXU_CMAP_THRESHOLD = 64   # above this, gather via one-hot matmul on the MXU


def _atan2_approx(y, x):
    """atan2 from abs/min/max/select + EUP approx reciprocal (epsilon-clamped)."""
    ax = jnp.abs(x)
    ay = jnp.abs(y)
    mx = jnp.maximum(ax, ay)
    mn = jnp.minimum(ax, ay)
    # Clamp: degenerate tangents (n parallel to d) give mx ~ 0; keep the approx
    # reciprocal finite so no NaN leaks through the polynomial (atan2(0,0)->0).
    a = mn * pl.reciprocal(jnp.maximum(mx, 1e-30), approx=True)   # in [0, 1]
    s = a * a
    p = a * (_A1 + s * (_A3 + s * (_A5 + s * (_A7 + s * _A9))))
    r = jnp.where(ay > ax, _HALF_PI - p, p)
    r = jnp.where(x < 0.0, _PI - r, r)
    return jnp.where(y < 0.0, -r, r)


def _tangent_shader_kernel(rot_ref, d_ref, n_ref, cmap_ref, o_ref, *,
                           degree, n_cmap, n_chan, use_mxu):
    # (8, tl) slabs: full sublane occupancy for all per-pixel math.
    dx = d_ref[0]; dy = d_ref[1]; dz = d_ref[2]
    nx = n_ref[0]; ny = n_ref[1]; nz = n_ref[2]

    # project_normals: t = n - (n . d) d
    ndot = nx * dx + ny * dy + nz * dz
    tx = nx - ndot * dx
    ty = ny - ndot * dy
    tz = nz - ndot * dz

    # Q.rotation(t, camera_orientation_conj): top two rows of the rotation
    # matrix are precomputed in the wrapper and passed as 6 SMEM scalars.
    # TODO(synk): Q module not provided; (w, x, y, z) unit-quaternion
    #             rotation convention assumed (matches the pure-JAX reference).
    r00 = rot_ref[0]; r01 = rot_ref[1]; r02 = rot_ref[2]
    r10 = rot_ref[3]; r11 = rot_ref[4]; r12 = rot_ref[5]
    real = r00 * tx + r01 * ty + r02 * tz
    imag = r10 * tx + r11 * ty + r12 * tz

    # angle_colouring bin index, float-frac form (no int mod / int cast):
    #   u = (atan2/tau + 0.5) * degree ; bin = floor((u - floor(u)) * N)
    ang = _atan2_approx(imag, real)
    u = ang * (degree / _TAU) + (0.5 * degree)
    frac = u - jnp.floor(u)
    bin_f = jnp.floor(frac * n_cmap)          # float bin id in [0, N-1]

    # domain_colouring magnitude |real + i*imag|
    mag = jnp.sqrt(real * real + imag * imag)

    if not use_mxu:
        # Small colourmap: pure-VPU compare/select gather over the whole slab.
        # One compare per bin shared across channels, colourmap entries read as
        # SMEM scalars; everything stays f32 (exact colours and brightness).
        accs = [jnp.zeros_like(mag) for _ in range(n_chan)]
        for j in range(n_cmap):                       # static unroll
            hit = bin_f == float(j)
            for c in range(n_chan):
                accs[c] = jnp.where(hit, cmap_ref[j * n_chan + c], accs[c])
        for c in range(n_chan):
            o_ref[c] = accs[c] * mag                  # dense (8, tl) stores
    else:
        # Large colourmap: constant 0/1 bf16 one-hot matmul on the MXU, one
        # sublane row at a time; f32 magnitude applied after the dot.
        cmap_bf = cmap_ref[...]                       # (C, N) bf16
        tl = mag.shape[1]
        rows = jax.lax.broadcasted_iota(jnp.float32, (n_cmap, tl), 0)
        res = []
        for s in range(_SUB):                         # static unroll
            onehot = (rows == bin_f[s:s + 1, :]).astype(jnp.bfloat16)
            r = jnp.dot(cmap_bf, onehot, preferred_element_type=jnp.float32)
            res.append(r * mag[s:s + 1, :])           # (C, tl) f32
        for c in range(n_chan):
            o_ref[c] = jnp.concatenate(
                [res[s][c:c + 1, :] for s in range(_SUB)], axis=0)


@functools.partial(jax.jit, static_argnums=(4,), static_argnames=("tile_lanes",))
def tangent_shader(camera_orientation_conj, ray_directions, surface_normals,
                   cyclic_colourmap, degree, *, tile_lanes=1024):
    batch_shape = ray_directions.shape[:-1]
    P = int(np.prod(batch_shape))
    n_cmap, n_chan = cyclic_colourmap.shape
    use_mxu = n_cmap > _MXU_CMAP_THRESHOLD

    # Pixel slab layout: pixels -> (8, L) with L a multiple of 128.
    L = pl.cdiv(P, _SUB * _LANE) * _LANE
    Ppad = _SUB * L

    # Lane tile: a vreg-pressure / pipelining knob, not a VMEM one (per-step
    # footprint at tl=1024 is <1 MiB — far below any generation's VMEM).
    tl = min(tile_lanes, L)
    half = (L // 2 // _LANE) * _LANE
    if half >= _LANE:
        tl = min(tl, half)         # grid_l >= 2 so both v7x TensorCores get work
    if use_mxu:
        # keep the (n_cmap, tl) one-hot intermediates to a few MiB
        cap = max(_LANE, ((4_000_000 // (6 * n_cmap)) // _LANE) * _LANE)
        tl = min(tl, cap)
    tl = max(_LANE, (tl // _LANE) * _LANE)
    grid_l = pl.cdiv(L, tl)

    # TODO(synk): these transposes/pads are separate XLA HBM passes (~3x the
    # kernel's own traffic); feeding planar component-major tensors upstream
    # and consuming the (C, 8, L) output directly would remove them.
    def prep(v):  # [..., 3] -> (3, 8, L)
        v = jnp.reshape(v, (P, 3)).T.astype(jnp.float32)
        v = jnp.pad(v, ((0, 0), (0, Ppad - P)))
        return v.reshape(3, _SUB, L)

    d = prep(ray_directions)
    n = prep(surface_normals)

    # Top two rows of the rotation matrix for q = (w, x, y, z), derived from
    # v' = v + 2*qv x (qv x v + w v).
    q = camera_orientation_conj.astype(jnp.float32)
    w, x, y, z = q[0], q[1], q[2], q[3]
    rot = jnp.stack([
        1.0 - 2.0 * (y * y + z * z), 2.0 * (x * y - w * z), 2.0 * (x * z + w * y),
        2.0 * (x * y + w * z), 1.0 - 2.0 * (x * x + z * z), 2.0 * (y * z - w * x),
    ])

    if use_mxu:
        cmap_in = cyclic_colourmap.T.astype(jnp.bfloat16)             # (C, N)
        cmap_spec = pl.BlockSpec((n_chan, n_cmap), lambda i: (0, 0))  # resident
    else:
        cmap_in = cyclic_colourmap.astype(jnp.float32).reshape(-1)    # (N*C,)
        cmap_spec = pl.BlockSpec(memory_space=pltpu.MemorySpace.SMEM)

    kernel = functools.partial(_tangent_shader_kernel, degree=float(degree),
                               n_cmap=n_cmap, n_chan=n_chan, use_mxu=use_mxu)

    out = pl.pallas_call(
        kernel,
        out_shape=jax.ShapeDtypeStruct((n_chan, _SUB, L), jnp.float32),
        grid=(grid_l,),
        in_specs=[
            pl.BlockSpec(memory_space=pltpu.MemorySpace.SMEM),   # rotation rows (6,)
            pl.BlockSpec((3, _SUB, tl), lambda i: (0, 0, i)),    # ray directions
            pl.BlockSpec((3, _SUB, tl), lambda i: (0, 0, i)),    # surface normals
            cmap_spec,                                           # colourmap
        ],
        out_specs=pl.BlockSpec((n_chan, _SUB, tl), lambda i: (0, 0, i)),
        compiler_params=pltpu.CompilerParams(
            dimension_semantics=("parallel",)),
    )(rot, d, n, cmap_in)

    out = out.transpose(1, 2, 0).reshape(Ppad, n_chan)[:P]
    return out.reshape(*batch_shape, n_chan)


def _reference(q, d, n, cmap, degree):
    """Pure-JAX reference mirroring the PyTorch forward (same Q convention)."""
    ndot = jnp.sum(n * d, axis=-1, keepdims=True)
    t = n - ndot * d
    qw = q[0]
    qv = jnp.broadcast_to(q[1:4], t.shape)
    u = jnp.cross(qv, t) + qw * t
    r = t + 2.0 * jnp.cross(qv, u)
    real, imag = r[..., 0], r[..., 1]
    N = cmap.shape[0]
    idx = jnp.mod(
        jnp.floor((jnp.arctan2(imag, real) / _TAU + 0.5) * degree * N).astype(jnp.int32),
        N)
    col = cmap[idx]
    mag = jnp.sqrt(real ** 2 + imag ** 2)[..., None]
    return col * mag


if __name__ == "__main__":
    key = jax.random.PRNGKey(0)
    k1, k2, k3, k4 = jax.random.split(key, 4)

    B, H, W = 2, 16, 16
    rays = jax.random.normal(k1, (B, H, W, 3), jnp.float32)
    rays = rays / jnp.linalg.norm(rays, axis=-1, keepdims=True)
    normals = jax.random.normal(k2, (B, H, W, 3), jnp.float32)
    normals = normals / jnp.linalg.norm(normals, axis=-1, keepdims=True)
    q = jax.random.normal(k3, (4,), jnp.float32)
    q = q / jnp.linalg.norm(q)
    cmap = jax.random.uniform(k4, (16, 3), jnp.float32)
    degree = 2

    out = tangent_shader(q, rays, normals, cmap, degree)
    out = jax.block_until_ready(out)
    assert out.shape == (B, H, W, 3)

    ref = _reference(q, rays, normals, cmap, degree)
    # Colours/brightness are f32-exact now; only pixels whose angle lies within
    # the approx-reciprocal / polynomial error (~1e-4 rad) of a bin edge can
    # land in the adjacent colour bin.  Allow a small mismatch-fraction budget.
    bad = jnp.abs(out - ref) > 5e-3 * (1.0 + jnp.abs(ref))
    mismatch = float(jnp.mean(bad.astype(jnp.float32)))
    assert mismatch < 0.02, f"mismatch fraction too high: {mismatch}"

    print("KERNEL_OK")
</pallas_src>

<mosaic_0001>
module attributes {stable_mosaic.version = 11 : i64} {
  func.func @_tangent_shader_kernel(%arg0: i32, %arg1: memref<6xf32, #tpu.memory_space<smem>>, %arg2: memref<3x8x128xf32, #tpu.memory_space<vmem>>, %arg3: memref<3x8x128xf32, #tpu.memory_space<vmem>>, %arg4: memref<48xf32, #tpu.memory_space<smem>>, %arg5: memref<3x8x128xf32, #tpu.memory_space<vmem>>) attributes {dimension_semantics = [#tpu.dimension_semantics<parallel>], iteration_bounds = array<i64: 1>, scalar_prefetch = 0 : i64, scratch_operands = 0 : i64, tpu.core_type = #tpu.core_type<tc>, window_params = [{transform_indices = @transform_0, window_bounds = array<i64: 6>}, {transform_indices = @transform_1, window_bounds = array<i64: 3, 8, 128>}, {transform_indices = @transform_2, window_bounds = array<i64: 3, 8, 128>}, {transform_indices = @transform_3, window_bounds = array<i64: 48>}, {transform_indices = @transform_4, window_bounds = array<i64: 3, 8, 128>}]} {
    %c0 = arith.constant 0 : index
    %c0_0 = arith.constant 0 : index
    %c0_1 = arith.constant 0 : index
    %0 = vector.load %arg2[%c0, %c0_0, %c0_1] : memref<3x8x128xf32, #tpu.memory_space<vmem>>, vector<1x8x128xf32>
    %1 = vector.shape_cast %0 : vector<1x8x128xf32> to vector<8x128xf32>
    %c1 = arith.constant 1 : index
    %c0_2 = arith.constant 0 : index
    %c0_3 = arith.constant 0 : index
    %2 = vector.load %arg2[%c1, %c0_2, %c0_3] : memref<3x8x128xf32, #tpu.memory_space<vmem>>, vector<1x8x128xf32>
    %3 = vector.shape_cast %2 : vector<1x8x128xf32> to vector<8x128xf32>
    %c2 = arith.constant 2 : index
    %c0_4 = arith.constant 0 : index
    %c0_5 = arith.constant 0 : index
    %4 = vector.load %arg2[%c2, %c0_4, %c0_5] : memref<3x8x128xf32, #tpu.memory_space<vmem>>, vector<1x8x128xf32>
    %5 = vector.shape_cast %4 : vector<1x8x128xf32> to vector<8x128xf32>
    %c0_6 = arith.constant 0 : index
    %c0_7 = arith.constant 0 : index
    %c0_8 = arith.constant 0 : index
    %6 = vector.load %arg3[%c0_6, %c0_7, %c0_8] : memref<3x8x128xf32, #tpu.memory_space<vmem>>, vector<1x8x128xf32>
    %7 = vector.shape_cast %6 : vector<1x8x128xf32> to vector<8x128xf32>
    %c1_9 = arith.constant 1 : index
    %c0_10 = arith.constant 0 : index
    %c0_11 = arith.constant 0 : index
    %8 = vector.load %arg3[%c1_9, %c0_10, %c0_11] : memref<3x8x128xf32, #tpu.memory_space<vmem>>, vector<1x8x128xf32>
    %9 = vector.shape_cast %8 : vector<1x8x128xf32> to vector<8x128xf32>
    %c2_12 = arith.constant 2 : index
    %c0_13 = arith.constant 0 : index
    %c0_14 = arith.constant 0 : index
    %10 = vector.load %arg3[%c2_12, %c0_13, %c0_14] : memref<3x8x128xf32, #tpu.memory_space<vmem>>, vector<1x8x128xf32>
    %11 = vector.shape_cast %10 : vector<1x8x128xf32> to vector<8x128xf32>
    %12 = arith.mulf %7, %1 : vector<8x128xf32>
    %13 = arith.mulf %9, %3 : vector<8x128xf32>
    %14 = arith.addf %12, %13 : vector<8x128xf32>
    %15 = arith.mulf %11, %5 : vector<8x128xf32>
    %16 = arith.addf %14, %15 : vector<8x128xf32>
    %17 = arith.mulf %16, %1 : vector<8x128xf32>
    %18 = arith.subf %7, %17 : vector<8x128xf32>
    %19 = arith.mulf %16, %3 : vector<8x128xf32>
    %20 = arith.subf %9, %19 : vector<8x128xf32>
    %21 = arith.mulf %16, %5 : vector<8x128xf32>
    %22 = arith.subf %11, %21 : vector<8x128xf32>
    %c0_15 = arith.constant 0 : index
    %23 = memref.load %arg1[%c0_15] : memref<6xf32, #tpu.memory_space<smem>>
    %c1_16 = arith.constant 1 : index
    %24 = memref.load %arg1[%c1_16] : memref<6xf32, #tpu.memory_space<smem>>
    %c2_17 = arith.constant 2 : index
    %25 = memref.load %arg1[%c2_17] : memref<6xf32, #tpu.memory_space<smem>>
    %c3 = arith.constant 3 : index
    %26 = memref.load %arg1[%c3] : memref<6xf32, #tpu.memory_space<smem>>
    %c4 = arith.constant 4 : index
    %27 = memref.load %arg1[%c4] : memref<6xf32, #tpu.memory_space<smem>>
    %c5 = arith.constant 5 : index
    %28 = memref.load %arg1[%c5] : memref<6xf32, #tpu.memory_space<smem>>
    %29 = vector.broadcast %23 : f32 to vector<8x128xf32>
    %30 = arith.mulf %29, %18 : vector<8x128xf32>
    %31 = vector.broadcast %24 : f32 to vector<8x128xf32>
    %32 = arith.mulf %31, %20 : vector<8x128xf32>
    %33 = arith.addf %30, %32 : vector<8x128xf32>
    %34 = vector.broadcast %25 : f32 to vector<8x128xf32>
    %35 = arith.mulf %34, %22 : vector<8x128xf32>
    %36 = arith.addf %33, %35 : vector<8x128xf32>
    %37 = vector.broadcast %26 : f32 to vector<8x128xf32>
    %38 = arith.mulf %37, %18 : vector<8x128xf32>
    %39 = vector.broadcast %27 : f32 to vector<8x128xf32>
    %40 = arith.mulf %39, %20 : vector<8x128xf32>
    %41 = arith.addf %38, %40 : vector<8x128xf32>
    %42 = vector.broadcast %28 : f32 to vector<8x128xf32>
    %43 = arith.mulf %42, %22 : vector<8x128xf32>
    %44 = arith.addf %41, %43 : vector<8x128xf32>
    %45 = math.absf %36 : vector<8x128xf32>
    %46 = math.absf %44 : vector<8x128xf32>
    %47 = arith.maximumf %45, %46 : vector<8x128xf32>
    %48 = arith.minimumf %45, %46 : vector<8x128xf32>
    %cst = arith.constant 1.000000e-30 : f32
    %49 = vector.broadcast %cst : f32 to vector<8x128xf32>
    %50 = arith.maximumf %47, %49 : vector<8x128xf32>
    %51 = tpu.reciprocal %50 {approx = true} : vector<8x128xf32> -> vector<8x128xf32>
    %52 = arith.mulf %48, %51 : vector<8x128xf32>
    %53 = arith.mulf %52, %52 : vector<8x128xf32>
    %cst_18 = arith.constant 2.083510e-02 : f32
    %54 = vector.broadcast %cst_18 : f32 to vector<8x128xf32>
    %55 = arith.mulf %53, %54 : vector<8x128xf32>
    %cst_19 = arith.constant -8.513300e-02 : f32
    %56 = vector.broadcast %cst_19 : f32 to vector<8x128xf32>
    %57 = arith.addf %56, %55 : vector<8x128xf32>
    %58 = arith.mulf %53, %57 : vector<8x128xf32>
    %cst_20 = arith.constant 1.801410e-01 : f32
    %59 = vector.broadcast %cst_20 : f32 to vector<8x128xf32>
    %60 = arith.addf %59, %58 : vector<8x128xf32>
    %61 = arith.mulf %53, %60 : vector<8x128xf32>
    %cst_21 = arith.constant -0.330299497 : f32
    %62 = vector.broadcast %cst_21 : f32 to vector<8x128xf32>
    %63 = arith.addf %62, %61 : vector<8x128xf32>
    %64 = arith.mulf %53, %63 : vector<8x128xf32>
    %cst_22 = arith.constant 9.998660e-01 : f32
    %65 = vector.broadcast %cst_22 : f32 to vector<8x128xf32>
    %66 = arith.addf %65, %64 : vector<8x128xf32>
    %67 = arith.mulf %52, %66 : vector<8x128xf32>
    %68 = arith.cmpf ogt, %46, %45 : vector<8x128xf32>
    %cst_23 = arith.constant 1.57079637 : f32
    %69 = vector.broadcast %cst_23 : f32 to vector<8x128xf32>
    %70 = arith.subf %69, %67 : vector<8x128xf32>
    %71 = arith.select %68, %70, %67 : vector<8x128xi1>, vector<8x128xf32>
    %cst_24 = arith.constant 0.000000e+00 : f32
    %72 = vector.broadcast %cst_24 : f32 to vector<8x128xf32>
    %73 = arith.cmpf olt, %36, %72 : vector<8x128xf32>
    %cst_25 = arith.constant 3.14159274 : f32
    %74 = vector.broadcast %cst_25 : f32 to vector<8x128xf32>
    %75 = arith.subf %74, %71 : vector<8x128xf32>
    %76 = arith.select %73, %75, %71 : vector<8x128xi1>, vector<8x128xf32>
    %cst_26 = arith.constant 0.000000e+00 : f32
    %77 = vector.broadcast %cst_26 : f32 to vector<8x128xf32>
    %78 = arith.cmpf olt, %44, %77 : vector<8x128xf32>
    %cst_27 = arith.constant 0.000000e+00 : f32
    %79 = vector.broadcast %cst_27 : f32 to vector<8x128xf32>
    %80 = arith.subf %79, %76 : vector<8x128xf32>
    %81 = arith.select %78, %80, %76 : vector<8x128xi1>, vector<8x128xf32>
    %cst_28 = arith.constant 0.318309873 : f32
    %82 = vector.broadcast %cst_28 : f32 to vector<8x128xf32>
    %83 = arith.mulf %81, %82 : vector<8x128xf32>
    %cst_29 = arith.constant 1.000000e+00 : f32
    %84 = vector.broadcast %cst_29 : f32 to vector<8x128xf32>
    %85 = arith.addf %83, %84 : vector<8x128xf32>
    %86 = math.floor %85 : vector<8x128xf32>
    %87 = arith.subf %85, %86 : vector<8x128xf32>
    %cst_30 = arith.constant 1.600000e+01 : f32
    %88 = vector.broadcast %cst_30 : f32 to vector<8x128xf32>
    %89 = arith.mulf %87, %88 : vector<8x128xf32>
    %90 = math.floor %89 : vector<8x128xf32>
    %91 = arith.mulf %36, %36 : vector<8x128xf32>
    %92 = arith.mulf %44, %44 : vector<8x128xf32>
    %93 = arith.addf %91, %92 : vector<8x128xf32>
    %94 = math.sqrt %93 : vector<8x128xf32>
    %cst_31 = arith.constant 0.000000e+00 : f32
    %95 = vector.broadcast %cst_31 : f32 to vector<8x128xf32>
    %cst_32 = arith.constant 0.000000e+00 : f32
    %96 = vector.broadcast %cst_32 : f32 to vector<8x128xf32>
    %cst_33 = arith.constant 0.000000e+00 : f32
    %97 = vector.broadcast %cst_33 : f32 to vector<8x128xf32>
    %cst_34 = arith.constant 0.000000e+00 : f32
    %98 = vector.broadcast %cst_34 : f32 to vector<8x128xf32>
    %99 = arith.cmpf oeq, %90, %98 : vector<8x128xf32>
    %c0_35 = arith.constant 0 : index
    %100 = memref.load %arg4[%c0_35] : memref<48xf32, #tpu.memory_space<smem>>
    %101 = vector.broadcast %100 : f32 to vector<8x128xf32>
    %102 = arith.select %99, %101, %95 : vector<8x128xi1>, vector<8x128xf32>
    %c1_36 = arith.constant 1 : index
    %103 = memref.load %arg4[%c1_36] : memref<48xf32, #tpu.memory_space<smem>>
    %104 = vector.broadcast %103 : f32 to vector<8x128xf32>
    %105 = arith.select %99, %104, %96 : vector<8x128xi1>, vector<8x128xf32>
    %c2_37 = arith.constant 2 : index
    %106 = memref.load %arg4[%c2_37] : memref<48xf32, #tpu.memory_space<smem>>
    %107 = vector.broadcast %106 : f32 to vector<8x128xf32>
    %108 = arith.select %99, %107, %97 : vector<8x128xi1>, vector<8x128xf32>
    %cst_38 = arith.constant 1.000000e+00 : f32
    %109 = vector.broadcast %cst_38 : f32 to vector<8x128xf32>
    %110 = arith.cmpf oeq, %90, %109 : vector<8x128xf32>
    %c3_39 = arith.constant 3 : index
    %111 = memref.load %arg4[%c3_39] : memref<48xf32, #tpu.memory_space<smem>>
    %112 = vector.broadcast %111 : f32 to vector<8x128xf32>
    %113 = arith.select %110, %112, %102 : vector<8x128xi1>, vector<8x128xf32>
    %c4_40 = arith.constant 4 : index
    %114 = memref.load %arg4[%c4_40] : memref<48xf32, #tpu.memory_space<smem>>
    %115 = vector.broadcast %114 : f32 to vector<8x128xf32>
    %116 = arith.select %110, %115, %105 : vector<8x128xi1>, vector<8x128xf32>
    %c5_41 = arith.constant 5 : index
    %117 = memref.load %arg4[%c5_41] : memref<48xf32, #tpu.memory_space<smem>>
    %118 = vector.broadcast %117 : f32 to vector<8x128xf32>
    %119 = arith.select %110, %118, %108 : vector<8x128xi1>, vector<8x128xf32>
    %cst_42 = arith.constant 2.000000e+00 : f32
    %120 = vector.broadcast %cst_42 : f32 to vector<8x128xf32>
    %121 = arith.cmpf oeq, %90, %120 : vector<8x128xf32>
    %c6 = arith.constant 6 : index
    %122 = memref.load %arg4[%c6] : memref<48xf32, #tpu.memory_space<smem>>
    %123 = vector.broadcast %122 : f32 to vector<8x128xf32>
    %124 = arith.select %121, %123, %113 : vector<8x128xi1>, vector<8x128xf32>
    %c7 = arith.constant 7 : index
    %125 = memref.load %arg4[%c7] : memref<48xf32, #tpu.memory_space<smem>>
    %126 = vector.broadcast %125 : f32 to vector<8x128xf32>
    %127 = arith.select %121, %126, %116 : vector<8x128xi1>, vector<8x128xf32>
    %c8 = arith.constant 8 : index
    %128 = memref.load %arg4[%c8] : memref<48xf32, #tpu.memory_space<smem>>
    %129 = vector.broadcast %128 : f32 to vector<8x128xf32>
    %130 = arith.select %121, %129, %119 : vector<8x128xi1>, vector<8x128xf32>
    %cst_43 = arith.constant 3.000000e+00 : f32
    %131 = vector.broadcast %cst_43 : f32 to vector<8x128xf32>
    %132 = arith.cmpf oeq, %90, %131 : vector<8x128xf32>
    %c9 = arith.constant 9 : index
    %133 = memref.load %arg4[%c9] : memref<48xf32, #tpu.memory_space<smem>>
    %134 = vector.broadcast %133 : f32 to vector<8x128xf32>
    %135 = arith.select %132, %134, %124 : vector<8x128xi1>, vector<8x128xf32>
    %c10 = arith.constant 10 : index
    %136 = memref.load %arg4[%c10] : memref<48xf32, #tpu.memory_space<smem>>
    %137 = vector.broadcast %136 : f32 to vector<8x128xf32>
    %138 = arith.select %132, %137, %127 : vector<8x128xi1>, vector<8x128xf32>
    %c11 = arith.constant 11 : index
    %139 = memref.load %arg4[%c11] : memref<48xf32, #tpu.memory_space<smem>>
    %140 = vector.broadcast %139 : f32 to vector<8x128xf32>
    %141 = arith.select %132, %140, %130 : vector<8x128xi1>, vector<8x128xf32>
    %cst_44 = arith.constant 4.000000e+00 : f32
    %142 = vector.broadcast %cst_44 : f32 to vector<8x128xf32>
    %143 = arith.cmpf oeq, %90, %142 : vector<8x128xf32>
    %c12 = arith.constant 12 : index
    %144 = memref.load %arg4[%c12] : memref<48xf32, #tpu.memory_space<smem>>
    %145 = vector.broadcast %144 : f32 to vector<8x128xf32>
    %146 = arith.select %143, %145, %135 : vector<8x128xi1>, vector<8x128xf32>
    %c13 = arith.constant 13 : index
    %147 = memref.load %arg4[%c13] : memref<48xf32, #tpu.memory_space<smem>>
    %148 = vector.broadcast %147 : f32 to vector<8x128xf32>
    %149 = arith.select %143, %148, %138 : vector<8x128xi1>, vector<8x128xf32>
    %c14 = arith.constant 14 : index
    %150 = memref.load %arg4[%c14] : memref<48xf32, #tpu.memory_space<smem>>
    %151 = vector.broadcast %150 : f32 to vector<8x128xf32>
    %152 = arith.select %143, %151, %141 : vector<8x128xi1>, vector<8x128xf32>
    %cst_45 = arith.constant 5.000000e+00 : f32
    %153 = vector.broadcast %cst_45 : f32 to vector<8x128xf32>
    %154 = arith.cmpf oeq, %90, %153 : vector<8x128xf32>
    %c15 = arith.constant 15 : index
    %155 = memref.load %arg4[%c15] : memref<48xf32, #tpu.memory_space<smem>>
    %156 = vector.broadcast %155 : f32 to vector<8x128xf32>
    %157 = arith.select %154, %156, %146 : vector<8x128xi1>, vector<8x128xf32>
    %c16 = arith.constant 16 : index
    %158 = memref.load %arg4[%c16] : memref<48xf32, #tpu.memory_space<smem>>
    %159 = vector.broadcast %158 : f32 to vector<8x128xf32>
    %160 = arith.select %154, %159, %149 : vector<8x128xi1>, vector<8x128xf32>
    %c17 = arith.constant 17 : index
    %161 = memref.load %arg4[%c17] : memref<48xf32, #tpu.memory_space<smem>>
    %162 = vector.broadcast %161 : f32 to vector<8x128xf32>
    %163 = arith.select %154, %162, %152 : vector<8x128xi1>, vector<8x128xf32>
    %cst_46 = arith.constant 6.000000e+00 : f32
    %164 = vector.broadcast %cst_46 : f32 to vector<8x128xf32>
    %165 = arith.cmpf oeq, %90, %164 : vector<8x128xf32>
    %c18 = arith.constant 18 : index
    %166 = memref.load %arg4[%c18] : memref<48xf32, #tpu.memory_space<smem>>
    %167 = vector.broadcast %166 : f32 to vector<8x128xf32>
    %168 = arith.select %165, %167, %157 : vector<8x128xi1>, vector<8x128xf32>
    %c19 = arith.constant 19 : index
    %169 = memref.load %arg4[%c19] : memref<48xf32, #tpu.memory_space<smem>>
    %170 = vector.broadcast %169 : f32 to vector<8x128xf32>
    %171 = arith.select %165, %170, %160 : vector<8x128xi1>, vector<8x128xf32>
    %c20 = arith.constant 20 : index
    %172 = memref.load %arg4[%c20] : memref<48xf32, #tpu.memory_space<smem>>
    %173 = vector.broadcast %172 : f32 to vector<8x128xf32>
    %174 = arith.select %165, %173, %163 : vector<8x128xi1>, vector<8x128xf32>
    %cst_47 = arith.constant 7.000000e+00 : f32
    %175 = vector.broadcast %cst_47 : f32 to vector<8x128xf32>
    %176 = arith.cmpf oeq, %90, %175 : vector<8x128xf32>
    %c21 = arith.constant 21 : index
    %177 = memref.load %arg4[%c21] : memref<48xf32, #tpu.memory_space<smem>>
    %178 = vector.broadcast %177 : f32 to vector<8x128xf32>
    %179 = arith.select %176, %178, %168 : vector<8x128xi1>, vector<8x128xf32>
    %c22 = arith.constant 22 : index
    %180 = memref.load %arg4[%c22] : memref<48xf32, #tpu.memory_space<smem>>
    %181 = vector.broadcast %180 : f32 to vector<8x128xf32>
    %182 = arith.select %176, %181, %171 : vector<8x128xi1>, vector<8x128xf32>
    %c23 = arith.constant 23 : index
    %183 = memref.load %arg4[%c23] : memref<48xf32, #tpu.memory_space<smem>>
    %184 = vector.broadcast %183 : f32 to vector<8x128xf32>
    %185 = arith.select %176, %184, %174 : vector<8x128xi1>, vector<8x128xf32>
    %cst_48 = arith.constant 8.000000e+00 : f32
    %186 = vector.broadcast %cst_48 : f32 to vector<8x128xf32>
    %187 = arith.cmpf oeq, %90, %186 : vector<8x128xf32>
    %c24 = arith.constant 24 : index
    %188 = memref.load %arg4[%c24] : memref<48xf32, #tpu.memory_space<smem>>
    %189 = vector.broadcast %188 : f32 to vector<8x128xf32>
    %190 = arith.select %187, %189, %179 : vector<8x128xi1>, vector<8x128xf32>
    %c25 = arith.constant 25 : index
    %191 = memref.load %arg4[%c25] : memref<48xf32, #tpu.memory_space<smem>>
    %192 = vector.broadcast %191 : f32 to vector<8x128xf32>
    %193 = arith.select %187, %192, %182 : vector<8x128xi1>, vector<8x128xf32>
    %c26 = arith.constant 26 : index
    %194 = memref.load %arg4[%c26] : memref<48xf32, #tpu.memory_space<smem>>
    %195 = vector.broadcast %194 : f32 to vector<8x128xf32>
    %196 = arith.select %187, %195, %185 : vector<8x128xi1>, vector<8x128xf32>
    %cst_49 = arith.constant 9.000000e+00 : f32
    %197 = vector.broadcast %cst_49 : f32 to vector<8x128xf32>
    %198 = arith.cmpf oeq, %90, %197 : vector<8x128xf32>
    %c27 = arith.constant 27 : index
    %199 = memref.load %arg4[%c27] : memref<48xf32, #tpu.memory_space<smem>>
    %200 = vector.broadcast %199 : f32 to vector<8x128xf32>
    %201 = arith.select %198, %200, %190 : vector<8x128xi1>, vector<8x128xf32>
    %c28 = arith.constant 28 : index
    %202 = memref.load %arg4[%c28] : memref<48xf32, #tpu.memory_space<smem>>
    %203 = vector.broadcast %202 : f32 to vector<8x128xf32>
    %204 = arith.select %198, %203, %193 : vector<8x128xi1>, vector<8x128xf32>
    %c29 = arith.constant 29 : index
    %205 = memref.load %arg4[%c29] : memref<48xf32, #tpu.memory_space<smem>>
    %206 = vector.broadcast %205 : f32 to vector<8x128xf32>
    %207 = arith.select %198, %206, %196 : vector<8x128xi1>, vector<8x128xf32>
    %cst_50 = arith.constant 1.000000e+01 : f32
    %208 = vector.broadcast %cst_50 : f32 to vector<8x128xf32>
    %209 = arith.cmpf oeq, %90, %208 : vector<8x128xf32>
    %c30 = arith.constant 30 : index
    %210 = memref.load %arg4[%c30] : memref<48xf32, #tpu.memory_space<smem>>
    %211 = vector.broadcast %210 : f32 to vector<8x128xf32>
    %212 = arith.select %209, %211, %201 : vector<8x128xi1>, vector<8x128xf32>
    %c31 = arith.constant 31 : index
    %213 = memref.load %arg4[%c31] : memref<48xf32, #tpu.memory_space<smem>>
    %214 = vector.broadcast %213 : f32 to vector<8x128xf32>
    %215 = arith.select %209, %214, %204 : vector<8x128xi1>, vector<8x128xf32>
    %c32 = arith.constant 32 : index
    %216 = memref.load %arg4[%c32] : memref<48xf32, #tpu.memory_space<smem>>
    %217 = vector.broadcast %216 : f32 to vector<8x128xf32>
    %218 = arith.select %209, %217, %207 : vector<8x128xi1>, vector<8x128xf32>
    %cst_51 = arith.constant 1.100000e+01 : f32
    %219 = vector.broadcast %cst_51 : f32 to vector<8x128xf32>
    %220 = arith.cmpf oeq, %90, %219 : vector<8x128xf32>
    %c33 = arith.constant 33 : index
    %221 = memref.load %arg4[%c33] : memref<48xf32, #tpu.memory_space<smem>>
    %222 = vector.broadcast %221 : f32 to vector<8x128xf32>
    %223 = arith.select %220, %222, %212 : vector<8x128xi1>, vector<8x128xf32>
    %c34 = arith.constant 34 : index
    %224 = memref.load %arg4[%c34] : memref<48xf32, #tpu.memory_space<smem>>
    %225 = vector.broadcast %224 : f32 to vector<8x128xf32>
    %226 = arith.select %220, %225, %215 : vector<8x128xi1>, vector<8x128xf32>
    %c35 = arith.constant 35 : index
    %227 = memref.load %arg4[%c35] : memref<48xf32, #tpu.memory_space<smem>>
    %228 = vector.broadcast %227 : f32 to vector<8x128xf32>
    %229 = arith.select %220, %228, %218 : vector<8x128xi1>, vector<8x128xf32>
    %cst_52 = arith.constant 1.200000e+01 : f32
    %230 = vector.broadcast %cst_52 : f32 to vector<8x128xf32>
    %231 = arith.cmpf oeq, %90, %230 : vector<8x128xf32>
    %c36 = arith.constant 36 : index
    %232 = memref.load %arg4[%c36] : memref<48xf32, #tpu.memory_space<smem>>
    %233 = vector.broadcast %232 : f32 to vector<8x128xf32>
    %234 = arith.select %231, %233, %223 : vector<8x128xi1>, vector<8x128xf32>
    %c37 = arith.constant 37 : index
    %235 = memref.load %arg4[%c37] : memref<48xf32, #tpu.memory_space<smem>>
    %236 = vector.broadcast %235 : f32 to vector<8x128xf32>
    %237 = arith.select %231, %236, %226 : vector<8x128xi1>, vector<8x128xf32>
    %c38 = arith.constant 38 : index
    %238 = memref.load %arg4[%c38] : memref<48xf32, #tpu.memory_space<smem>>
    %239 = vector.broadcast %238 : f32 to vector<8x128xf32>
    %240 = arith.select %231, %239, %229 : vector<8x128xi1>, vector<8x128xf32>
    %cst_53 = arith.constant 1.300000e+01 : f32
    %241 = vector.broadcast %cst_53 : f32 to vector<8x128xf32>
    %242 = arith.cmpf oeq, %90, %241 : vector<8x128xf32>
    %c39 = arith.constant 39 : index
    %243 = memref.load %arg4[%c39] : memref<48xf32, #tpu.memory_space<smem>>
    %244 = vector.broadcast %243 : f32 to vector<8x128xf32>
    %245 = arith.select %242, %244, %234 : vector<8x128xi1>, vector<8x128xf32>
    %c40 = arith.constant 40 : index
    %246 = memref.load %arg4[%c40] : memref<48xf32, #tpu.memory_space<smem>>
    %247 = vector.broadcast %246 : f32 to vector<8x128xf32>
    %248 = arith.select %242, %247, %237 : vector<8x128xi1>, vector<8x128xf32>
    %c41 = arith.constant 41 : index
    %249 = memref.load %arg4[%c41] : memref<48xf32, #tpu.memory_space<smem>>
    %250 = vector.broadcast %249 : f32 to vector<8x128xf32>
    %251 = arith.select %242, %250, %240 : vector<8x128xi1>, vector<8x128xf32>
    %cst_54 = arith.constant 1.400000e+01 : f32
    %252 = vector.broadcast %cst_54 : f32 to vector<8x128xf32>
    %253 = arith.cmpf oeq, %90, %252 : vector<8x128xf32>
    %c42 = arith.constant 42 : index
    %254 = memref.load %arg4[%c42] : memref<48xf32, #tpu.memory_space<smem>>
    %255 = vector.broadcast %254 : f32 to vector<8x128xf32>
    %256 = arith.select %253, %255, %245 : vector<8x128xi1>, vector<8x128xf32>
    %c43 = arith.constant 43 : index
    %257 = memref.load %arg4[%c43] : memref<48xf32, #tpu.memory_space<smem>>
    %258 = vector.broadcast %257 : f32 to vector<8x128xf32>
    %259 = arith.select %253, %258, %248 : vector<8x128xi1>, vector<8x128xf32>
    %c44 = arith.constant 44 : index
    %260 = memref.load %arg4[%c44] : memref<48xf32, #tpu.memory_space<smem>>
    %261 = vector.broadcast %260 : f32 to vector<8x128xf32>
    %262 = arith.select %253, %261, %251 : vector<8x128xi1>, vector<8x128xf32>
    %cst_55 = arith.constant 1.500000e+01 : f32
    %263 = vector.broadcast %cst_55 : f32 to vector<8x128xf32>
    %264 = arith.cmpf oeq, %90, %263 : vector<8x128xf32>
    %c45 = arith.constant 45 : index
    %265 = memref.load %arg4[%c45] : memref<48xf32, #tpu.memory_space<smem>>
    %266 = vector.broadcast %265 : f32 to vector<8x128xf32>
    %267 = arith.select %264, %266, %256 : vector<8x128xi1>, vector<8x128xf32>
    %c46 = arith.constant 46 : index
    %268 = memref.load %arg4[%c46] : memref<48xf32, #tpu.memory_space<smem>>
    %269 = vector.broadcast %268 : f32 to vector<8x128xf32>
    %270 = arith.select %264, %269, %259 : vector<8x128xi1>, vector<8x128xf32>
    %c47 = arith.constant 47 : index
    %271 = memref.load %arg4[%c47] : memref<48xf32, #tpu.memory_space<smem>>
    %272 = vector.broadcast %271 : f32 to vector<8x128xf32>
    %273 = arith.select %264, %272, %262 : vector<8x128xi1>, vector<8x128xf32>
    %274 = arith.mulf %267, %94 : vector<8x128xf32>
    %c0_56 = arith.constant 0 : index
    %c0_57 = arith.constant 0 : index
    %c0_58 = arith.constant 0 : index
    %275 = vector.load %arg5[%c0_56, %c0_57, %c0_58] : memref<3x8x128xf32, #tpu.memory_space<vmem>>, vector<1x8x128xf32>
    %276 = vector.shape_cast %275 : vector<1x8x128xf32> to vector<8x128xf32>
    %277 = vector.shape_cast %274 : vector<8x128xf32> to vector<1x8x128xf32>
    tpu.vector_store %arg5[%c0_56, %c0_57, %c0_58], %277 {strides = array<i32>} : memref<3x8x128xf32, #tpu.memory_space<vmem>>, vector<1x8x128xf32>,
    %278 = arith.mulf %270, %94 : vector<8x128xf32>
    %c1_59 = arith.constant 1 : index
    %c0_60 = arith.constant 0 : index
    %c0_61 = arith.constant 0 : index
    %279 = vector.load %arg5[%c1_59, %c0_60, %c0_61] : memref<3x8x128xf32, #tpu.memory_space<vmem>>, vector<1x8x128xf32>
    %280 = vector.shape_cast %279 : vector<1x8x128xf32> to vector<8x128xf32>
    %281 = vector.shape_cast %278 : vector<8x128xf32> to vector<1x8x128xf32>
    tpu.vector_store %arg5[%c1_59, %c0_60, %c0_61], %281 {strides = array<i32>} : memref<3x8x128xf32, #tpu.memory_space<vmem>>, vector<1x8x128xf32>,
    %282 = arith.mulf %273, %94 : vector<8x128xf32>
    %c2_62 = arith.constant 2 : index
    %c0_63 = arith.constant 0 : index
    %c0_64 = arith.constant 0 : index
    %283 = vector.load %arg5[%c2_62, %c0_63, %c0_64] : memref<3x8x128xf32, #tpu.memory_space<vmem>>, vector<1x8x128xf32>
    %284 = vector.shape_cast %283 : vector<1x8x128xf32> to vector<8x128xf32>
    %285 = vector.shape_cast %282 : vector<8x128xf32> to vector<1x8x128xf32>
    tpu.vector_store %arg5[%c2_62, %c0_63, %c0_64], %285 {strides = array<i32>} : memref<3x8x128xf32, #tpu.memory_space<vmem>>, vector<1x8x128xf32>,
    return
  }
  func.func @transform_0(%arg0: i32) -> i32 {
    %c0_i32 = arith.constant 0 : i32
    %c0_i32_0 = arith.constant 0 : i32
    return %c0_i32 : i32
  }
  func.func @transform_1(%arg0: i32) -> (i32, i32, i32) {
    %c0_i32 = arith.constant 0 : i32
    %c0_i32_0 = arith.constant 0 : i32
    %c0_i32_1 = arith.constant 0 : i32
    return %c0_i32, %c0_i32_0, %arg0 : i32, i32, i32
  }
  func.func @transform_2(%arg0: i32) -> (i32, i32, i32) {
    %c0_i32 = arith.constant 0 : i32
    %c0_i32_0 = arith.constant 0 : i32
    %c0_i32_1 = arith.constant 0 : i32
    return %c0_i32, %c0_i32_0, %arg0 : i32, i32, i32
  }
  func.func @transform_3(%arg0: i32) -> i32 {
    %c0_i32 = arith.constant 0 : i32
    %c0_i32_0 = arith.constant 0 : i32
    return %c0_i32 : i32
  }
  func.func @transform_4(%arg0: i32) -> (i32, i32, i32) {
    %c0_i32 = arith.constant 0 : i32
    %c0_i32_0 = arith.constant 0 : i32
    %c0_i32_1 = arith.constant 0 : i32
    return %c0_i32, %c0_i32_0, %arg0 : i32, i32, i32
  }
}

</mosaic_0001>

<bundles_post_ra>
// kernel: tangent_shader.1
= control target key start
LH: loop header
LB: loop body
LE: loop exit
PB: predicated region body
PF: predicated region fallthrough
CT: control target
= control target key end

     0   :  { %s737_s0 = inlined_call_operand.vmem [shape: f32[6], index: 0, kind: input, shape index: {}]   ;;  %s738_s1 = inlined_call_operand.vmem [shape: f32[3,8,128], index: 1, kind: input, shape index: {}]   ;;  %s739_s2 = inlined_call_operand.vmem [shape: f32[3,8,128], index: 2, kind: input, shape index: {}]   ;;  %s740_s3 = inlined_call_operand.vmem [shape: f32[48], index: 3, kind: input, shape index: {}]   ;;  %s741_s4 = inlined_call_operand.vmem [shape: f32[3,8,128], index: 4, kind: output, shape index: {}]  }
   0x1   :  { %778 = sst [smem:[#allocation40_spill]] %s741_s4 }
   0x2   :  { %9 = vsyncpa [#allocation3], 0  ;;  %s17_s17 = sshll.u32 %s737_s0, 4  ;;  %s18_s17 = int_to_ptr.vmem [resolvable:$true] %s17_s17 }
   0x3   :  { %10 = vsyncpa [#allocation5], 0  ;;  %s31_s20 = sshll.u32 %s740_s3, 4  ;;  %s365_s21 = scalar_lea.vmem %s18_s17, 16  ;;  %s32_s20 = int_to_ptr.vmem [resolvable:$true] %s31_s20 }
   0x4   :  { %p366_p0 = scmp.ne.s32.totalorder %s18_s17, %s365_s21  ;;  %p370_p1 = scmp.lt.s32.totalorder %s18_s17, %s18_s17 }
   0x5   :  { %p371_p2 = scmp.lt.s32.totalorder %s365_s21, %s365_s21 }
   0x7   :  { %p372_p3 = por %p371_p2, %p370_p1 }
   0x9   :  { %p373_p4 = pnand %p372_p3, %p366_p0 }
   0xb   :  { %376 = shalt.err (!%p373_p4)
}
   0xc   :  { %s393_s22 = smov [#allocation2]   ;;  %s377_s23 = scalar_lea.vmem %s32_s20, 16 }
   0xd   :  { %20 = dma.vmem_to_smem %s18_s17, 16, %s393_s22, [#allocation3]  }
   0xe   :  { %p378_p5 = scmp.ne.s32.totalorder %s32_s20, %s377_s23  ;;  %p382_p6 = scmp.lt.s32.totalorder %s32_s20, %s32_s20 }
   0xf   :  { %p383_p7 = scmp.lt.s32.totalorder %s377_s23, %s377_s23 }
  0x11   :  { %p384_p8 = por %p383_p7, %p382_p6 }
  0x13   :  { %p385_p9 = pnand %p384_p8, %p378_p5 }
  0x15   :  { %388 = shalt.err (!%p385_p9)
}
  0x16   :  { %s394_s0 = smov [#allocation4]  }
  0x17   :  { %34 = dma.vmem_to_smem %s32_s20, 16, %s394_s0, [#allocation5]  }
  0x18   :  { %389 = dma.done.wait [#allocation3], 16  }
  0x19   :  { %390 = vsyncadd [#allocation3], 4294967280 }
  0x1a   :  { %391 = dma.done.wait [#allocation5], 16  }
  0x1b   :  { %392 = vsyncadd [#allocation5], 4294967280 }
  0x1c   :  { %41 = sfence }
  0x1d   :  { %v42_v0 = vld [vmem:[%s738_s1] sm:$0xff]  ;;  %v301_v1 = vld [vmem:[%s738_s1 + $0x8] sm:$0xff]  ;;  %v302_v2 = vld [vmem:[%s738_s1 + $0x10] sm:$0xff]  ;;  %s63_s29 = sld [smem:[#allocation2]]  ;;  %s305_s10 = sld [smem:[#allocation2 + $0x1]] }
  0x1e   :  { %v47_v3 = vld [vmem:[%s739_s2] sm:$0xff]  ;;  %v303_v4 = vld [vmem:[%s739_s2 + $0x8] sm:$0xff]  ;;  %v304_v5 = vld [vmem:[%s739_s2 + $0x10] sm:$0xff]  ;;  %s306_s11 = sld [smem:[#allocation2 + $0x2]]  ;;  %s307_s12 = sld [smem:[#allocation2 + $0x3]] }
  0x1f   :  { %v52_v6 = vmul.f32 %v47_v3, %v42_v0  ;;  %v53_v7 = vmul.f32 %v303_v4, %v301_v1  ;;  %v55_v8 = vmul.f32 %v304_v5, %v302_v2  ;;  %s308_s1 = sld [smem:[#allocation2 + $0x4]]  ;;  %s309_s13 = sld [smem:[#allocation2 + $0x5]] }
  0x20   :  { %s450_s2 = sld [smem:[#allocation4]]  ;;  %s452_s14 = sld [smem:[#allocation4 + $0x1]] }
  0x21   :  { %v54_v9 = vadd.f32 %v53_v7, %v52_v6  ;;  %s454_s15 = sld [smem:[#allocation4 + $0x2]]  ;;  %s456_s16 = sld [smem:[#allocation4 + $0x3]] }
  0x22   :  { %s458_s17 = sld [smem:[#allocation4 + $0x4]]  ;;  %s460_s18 = sld [smem:[#allocation4 + $0x5]] }
  0x23   :  { %v56_v10 = vadd.f32 %v55_v8, %v54_v9  ;;  %v69_v14 = vstv %s63_s29  ;;  %v71_v15 = vstv %s305_s10  ;;  %s462_s19 = sld [smem:[#allocation4 + $0x6]]  ;;  %s464_s20 = sld [smem:[#allocation4 + $0x7]] }
  0x24   :  { %v74_v16 = vstv %s306_s11  ;;  %v77_v17 = vstv %s307_s12  ;;  %s466_s21 = sld [smem:[#allocation4 + $0x8]]  ;;  %s468_s22 = sld [smem:[#allocation4 + $0x9]] }
  0x25   :  { %v57_v11 = vmul.f32 %v56_v10, %v42_v0  ;;  %v59_v12 = vmul.f32 %v301_v1, %v56_v10  ;;  %v61_v13 = vmul.f32 %v302_v2, %v56_v10  ;;  %v79_v18 = vstv %s308_s1  ;;  %s470_s23 = sld [smem:[#allocation4 + $0xa]]  ;;  %s472_s0 = sld [smem:[#allocation4 + $0xb]] }
  0x26   :  { %v82_v22 = vstv %s309_s13  ;;  %779 = sst [smem:[#allocation8_spill]] %s452_s14  ;;  %s474_s3 = sld [smem:[#allocation4 + $0xc]]  ;;  %v129_v58 = vstv %s450_s2  ;;  %v132_v59 = vstv %s452_s14 }
  0x27   :  { %v58_v19 = vsub.f32 %v47_v3, %v57_v11  ;;  %v60_v20 = vsub.f32 %v303_v4, %v59_v12  ;;  %v62_v21 = vsub.f32 %v304_v5, %v61_v13  ;;  %780 = sst [smem:[#allocation9_spill]] %s454_s15  ;;  %s476_s24 = sld [smem:[#allocation4 + $0xd]]  ;;  %v135_v60 = vstv %s454_s15 }
  0x28   :  { %781 = sst [smem:[#allocation10_spill]] %s456_s16  ;;  %s482_s25 = sld [smem:[#allocation4 + $0xe]]  ;;  %v139_v61 = vstv %s456_s16  ;;  %v142_v62 = vstv %s458_s17  ;;  %v145_v63 = vstv %s460_s18 }
  0x29   :  { %v70_v23 = vmul.f32 %v69_v14, %v58_v19  ;;  %v72_v24 = vmul.f32 %v71_v15, %v60_v20  ;;  %v75_v25 = vmul.f32 %v74_v16, %v62_v21  ;;  %v78_v26 = vmul.f32 %v77_v17, %v58_v19  ;;  %782 = sst [smem:[#allocation11_spill]] %s458_s17  ;;  %s484_s26 = sld [smem:[#allocation4 + $0xf]] }
  0x2a   :  { %v80_v27 = vmul.f32 %v79_v18, %v60_v20  ;;  %v83_v28 = vmul.f32 %v82_v22, %v62_v21  ;;  %783 = sst [smem:[#allocation12_spill]] %s460_s18  ;;  %s486_s27 = sld [smem:[#allocation4 + $0x10]]  ;;  %v149_v1 = vstv %s462_s19  ;;  %v152_v2 = vstv %s464_s20 }
  0x2b   :  { %v73_v29 = vadd.f32 %v72_v24, %v70_v23  ;;  %784 = sst [smem:[#allocation13_spill]] %s462_s19  ;;  %s488_s28 = sld [smem:[#allocation4 + $0x11]]  ;;  %v155_v3 = vstv %s466_s21  ;;  %v159_v5 = vstv %s468_s22  ;;  %v162_v6 = vstv %s470_s23 }
  0x2c   :  { %v81_v30 = vadd.f32 %v80_v27, %v78_v26  ;;  %785 = sst [smem:[#allocation14_spill]] %s464_s20  ;;  %s490_s29 = sld [smem:[#allocation4 + $0x12]]  ;;  %v165_v7 = vstv %s472_s0  ;;  %v169_v8 = vstv %s474_s3 }
  0x2d   :  { %v444_v31 = vadd.f32 %v75_v25, %v73_v29  ;;  %786 = sst [smem:[#allocation15_spill]] %s466_s21  ;;  %s492_s30 = sld [smem:[#allocation4 + $0x13]]  ;;  %v172_v9 = vstv %s476_s24 }
  0x2e   :  { %v446_v32 = vadd.f32 %v83_v28, %v81_v30  ;;  %787 = sst [smem:[#allocation16_spill]] %s468_s22  ;;  %s494_s5 = sld [smem:[#allocation4 + $0x14]]  ;;  %v175_v10 = vstv %s482_s25 }
  0x2f   :  { %v85_v33 = vand.u32 2147483647, %v444_v31  ;;  %788 = sst [smem:[#allocation17_spill]] %s470_s23  ;;  %v117_v49 = vmul.f32 %v444_v31, %v444_v31  ;;  %s496_s6 = sld [smem:[#allocation4 + $0x15]]  ;;  %vm105_vm1 = vcmp.lt.f32.partialorder %v444_v31, 0.0  ;;  %v179_v11 = vstv %s484_s26 }
  0x30   :  { %v86_v34 = vand.u32 2147483647, %v446_v32  ;;  %789 = sst [smem:[#allocation18_spill]] %s472_s0  ;;  %v118_v50 = vmul.f32 %v446_v32, %v446_v32  ;;  %s500_s7 = sld [smem:[#allocation4 + $0x16]]  ;;  %vm108_vm2 = vcmp.lt.f32.partialorder %v446_v32, 0.0  ;;  %v182_v13 = vstv %s486_s27 }
  0x31   :  { %790 = sst [smem:[#allocation19_spill]] %s474_s3  ;;  %s502_s8 = sld [smem:[#allocation4 + $0x17]]  ;;  %v185_v14 = vstv %s488_s28 }
  0x32   :  { %v87_v35 = vmax.f32 %v85_v33, %v86_v34  ;;  %v88_v37 = vmin.f32 %v85_v33, %v86_v34  ;;  %791 = sst [smem:[#allocation20_spill]] %s476_s24  ;;  %vm102_vm0 = vcmp.gt.f32.partialorder %v86_v34, %v85_v33  ;;  %v498_v53 = vadd.f32 %v118_v50, %v117_v49  ;;  %s504_s9 = sld [smem:[#allocation4 + $0x18]] }
  0x33   :  { %792 = sst [smem:[#allocation21_spill]] %s482_s25  ;;  %s506_s10 = sld [smem:[#allocation4 + $0x19]]  ;;  %v189_v15 = vstv %s490_s29  ;;  %v192_v16 = vstv %s492_s30 }
  0x34   :  { %v89_v36 = vmax.f32 %v87_v35, 1e-30  ;;  %793 = sst [smem:[#allocation22_spill]] %s484_s26  ;;  %s509_s11 = sld [smem:[#allocation4 + $0x1a]]  ;;  %v195_v17 = vstv %s494_s5  ;;  %vm122_vm3 = vcmp.eq.f32.partialorder %v498_v53, inf  ;;  %v125_v25 = vand.u32 2147483648, %v498_v53 }
  0x35   :  { %794 = sst [smem:[#allocation23_spill]] %s486_s27  ;;  %s511_s12 = sld [smem:[#allocation4 + $0x1b]]  ;;  %v199_v18 = vstv %s496_s6  ;;  %vm124_vm9 = vcmp.eq.f32.partialorder %v498_v53, 0.0 }
  0x36   :  { %361 = vrcp.f32 %v89_v36  ;;  %795 = sst [smem:[#allocation24_spill]] %s490_s29  ;;  %s513_s1 = sld [smem:[#allocation4 + $0x1c]]  ;;  %v202_v19 = vstv %s500_s7 }
  0x37   :  { %s515_s13 = sld [smem:[#allocation4 + $0x1d]]  ;;  %363 = vrsqrt.f32 %v498_v53  ;;  %s518_s4 = sld [smem:[#allocation4 + $0x1e]]  ;;  %v205_v21 = vstv %s502_s8 }
  0x38   :  { %s544_s14 = sld [smem:[#allocation4 + $0x26]]  ;;  %s546_s15 = sld [smem:[#allocation4 + $0x27]]  ;;  %v209_v22 = vstv %s504_s9 }
  0x39   :  { %796 = sst [smem:[#allocation25_spill]] %s506_s10  ;;  %s520_s10 = sld [smem:[#allocation4 + $0x1f]] }
  0x3a   :  { %797 = sst [smem:[#allocation26_spill]] %s509_s11  ;;  %s525_s11 = sld [smem:[#allocation4 + $0x21]] }
  0x3b   :  { %798 = sst [smem:[#allocation27_spill]] %s511_s12  ;;  %s523_s12 = sld [smem:[#allocation4 + $0x20]] }
  0x3c   :  { %s551_s18 = sld [smem:[#allocation4 + $0x28]]  ;;  %s553_s17 = sld [smem:[#allocation4 + $0x29]]  ;;  %v222_v29 = vstv %s513_s1 }
  0x3d   :  { %799 = sst [smem:[#allocation28_spill]] %s515_s13  ;;  %s529_s13 = sld [smem:[#allocation4 + $0x22]] }
  0x3e   :  { %800 = sst [smem:[#allocation29_spill]] %s518_s4  ;;  %s531_s4 = sld [smem:[#allocation4 + $0x23]] }
  0x3f   :  { %801 = sst [smem:[#allocation30_spill]] %s520_s10  ;;  %s559_s21 = sld [smem:[#allocation4 + $0x2a]]  ;;  %v232_v32 = vstv %s520_s10 }
  0x40   :  { %v362_v38 = vpop.eup %361  ;;  %803 = sst [smem:[#allocation32_spill]] %s525_s11  ;;  %s539_s11 = sld [smem:[#allocation4 + $0x25]] }
  0x41   :  { %v91_v39 = vmul.f32 %v362_v38, %v88_v37  ;;  %802 = sst [smem:[#allocation31_spill]] %s523_s12  ;;  %s537_s12 = sld [smem:[#allocation4 + $0x24]]  ;;  %v364_v24 = vpop.eup %363 }
  0x42   :  { %806 = sst [smem:[#allocation35_spill]] %s546_s15  ;;  %s810_s23 = sld [smem:[#allocation25_spill]]  ;;  %v121_v37 = vmul.f32 %v364_v24, %v498_v53 }
  0x43   :  { %v92_v40 = vmul.f32 %v91_v39, %v91_v39  ;;  %804 = sst [smem:[#allocation33_spill]] %s529_s13  ;;  %s561_s20 = sld [smem:[#allocation4 + $0x2b]]  ;;  %v242_v35 = vstv %s529_s13 }
  0x44   :  { %807 = sst [smem:[#allocation36_spill]] %s551_s18  ;;  %s811_s0 = sld [smem:[#allocation26_spill]]  ;;  %v245_v38 = vstv %s531_s4 }
  0x45   :  { %v93_v41 = vmul.f32 0.0208351, %v92_v40  ;;  %808 = sst [smem:[#allocation37_spill]] %s559_s21  ;;  %s566_s22 = sld [smem:[#allocation4 + $0x2c]] }
  0x46   :  { %s813_s19 = sld [smem:[#allocation27_spill]]  ;;  %s568_s16 = sld [smem:[#allocation4 + $0x2d]] }
  0x47   :  { %v94_v42 = vadd.f32 -0.085133, %v93_v41  ;;  %805 = sst [smem:[#allocation34_spill]] %s537_s12  ;;  %s815_s26 = sld [smem:[#allocation28_spill]]  ;;  %v255_v41 = vstv %s544_s14 }
  0x48   :  { %s816_s25 = sld [smem:[#allocation29_spill]]  ;;  %s574_s24 = sld [smem:[#allocation4 + $0x2e]]  ;;  %v212_v23 = vstv %s810_s23 }
  0x49   :  { %v95_v43 = vmul.f32 %v94_v42, %v92_v40  ;;  %809 = sst [smem:[#allocation38_spill]] %s561_s20  ;;  %s818_s3 = sld [smem:[#allocation31_spill]]  ;;  %v259_v42 = vstv %s546_s15 }
  0x4a   :  { %s576_s27 = sld [smem:[#allocation4 + $0x2f]]  ;;  %s820_s29 = sld [smem:[#allocation32_spill]]  ;;  %v215_v26 = vstv %s811_s0 }
  0x4b   :  { %v96_v44 = vadd.f32 0.180141, %v95_v43  ;;  %812 = sst [smem:[#allocation25_spill]] %s566_s22  ;;  %v262_v43 = vstv %s551_s18  ;;  %s853_s30 = sld [smem:[#allocation40_spill]] }
  0x4c   :  { %814 = sst [smem:[#allocation26_spill]] %s568_s16  ;;  %v219_v27 = vstv %s813_s19  ;;  %v279_v49 = vstv %s568_s16 }
  0x4d   :  { %v97_v45 = vmul.f32 %v96_v44, %v92_v40  ;;  %v225_v30 = vstv %s815_s26 }
  0x4e   :  { %817 = sst [smem:[#allocation27_spill]] %s574_s24  ;;  %v229_v31 = vstv %s816_s25  ;;  %v282_v50 = vstv %s574_s24 }
  0x4f   :  { %v98_v46 = vadd.f32 -0.3302995, %v97_v45  ;;  %v235_v33 = vstv %s818_s3  ;;  %v265_v45 = vstv %s553_s17 }
  0x50   :  { %819 = sst [smem:[#allocation39_spill]] %s576_s27  ;;  %v239_v34 = vstv %s820_s29 }
  0x51   :  { %v99_v47 = vmul.f32 %v98_v46, %v92_v40  ;;  %v252_v40 = vstv %s539_s11  ;;  %v269_v46 = vstv %s559_s21 }
  0x53   :  { %v100_v48 = vadd.f32 0.999866, %v99_v47  ;;  %v272_v47 = vstv %s561_s20 }
  0x55   :  { %v101_v51 = vmul.f32 %v100_v48, %v91_v39  ;;  %v249_v39 = vstv %s537_s12  ;;  %v275_v48 = vstv %s566_s22 }
  0x57   :  { %v103_v52 = vsub.f32 1.5707964, %v101_v51 }
  0x59   :  { %v104_v54 = vsel %vm102_vm0, %v103_v52, %v101_v51  ;;  %v285_v51 = vstv %s576_s27  ;;  %v123_v52 = vsel %vm122_vm3, %v498_v53, %v121_v37 }
  0x5a   :  { %v106_v55 = vsub.f32 3.1415927, %v104_v54 }
  0x5c   :  { %v107_v56 = vsel %vm105_vm1, %v106_v55, %v104_v54 }
  0x5d   :  { %v109_v57 = vsub.f32 0.0, %v107_v56 }
  0x5f   :  { %v110_v0 = vsel %vm108_vm2, %v109_v57, %v107_v56 }
  0x60   :  { %v111_v4 = vmul.f32 0.31830987, %v110_v0 }
  0x62   :  { %v112_v12 = vadd.f32 1.0, %v111_v4 }
  0x64   :  { %v113_v20 = vfloor.f32 %v112_v12 }
  0x66   :  { %v114_v28 = vsub.f32 %v112_v12, %v113_v20 }
  0x68   :  { %v115_v36 = vmul.f32 16.0, %v114_v28 }
  0x6a   :  { %v599_v44 = vfloor.f32 %v115_v36 }
  0x6c   :  { %vm127_vm4 = vcmp.eq.f32.partialorder %v599_v44, 0.0  ;;  %vm137_vm5 = vcmp.eq.f32.partialorder %v599_v44, 1.0  ;;  %vm147_vm6 = vcmp.eq.f32.partialorder %v599_v44, 2.0  ;;  %vm157_vm7 = vcmp.eq.f32.partialorder %v599_v44, 3.0 }
  0x6d   :  { %v130_v54 = vsel %vm127_vm4, %v129_v58, 0.0  ;;  %v133_v55 = vsel %vm127_vm4, %v132_v59, 0.0  ;;  %v136_v56 = vsel %vm127_vm4, %v135_v60, 0.0  ;;  %vm167_vm8 = vcmp.eq.f32.partialorder %v599_v44, 4.0 }
  0x6e   :  { %v140_v57 = vsel %vm137_vm5, %v139_v61, %v130_v54  ;;  %v143_v0 = vsel %vm137_vm5, %v142_v62, %v133_v55  ;;  %v146_v4 = vsel %vm137_vm5, %v145_v63, %v136_v56  ;;  %vm177_vm10 = vcmp.eq.f32.partialorder %v599_v44, 5.0 }
  0x6f   :  { %v150_v58 = vsel %vm147_vm6, %v149_v1, %v140_v57  ;;  %v153_v59 = vsel %vm147_vm6, %v152_v2, %v143_v0  ;;  %v156_v60 = vsel %vm147_vm6, %v155_v3, %v146_v4  ;;  %vm187_vm11 = vcmp.eq.f32.partialorder %v599_v44, 6.0 }
  0x70   :  { %v160_v61 = vsel %vm157_vm7, %v159_v5, %v150_v58  ;;  %v163_v62 = vsel %vm157_vm7, %v162_v6, %v153_v59  ;;  %v166_v63 = vsel %vm157_vm7, %v165_v7, %v156_v60  ;;  %vm197_vm12 = vcmp.eq.f32.partialorder %v599_v44, 7.0 }
  0x71   :  { %v170_v1 = vsel %vm167_vm8, %v169_v8, %v160_v61  ;;  %v173_v2 = vsel %vm167_vm8, %v172_v9, %v163_v62  ;;  %v176_v3 = vsel %vm167_vm8, %v175_v10, %v166_v63  ;;  %vm207_vm13 = vcmp.eq.f32.partialorder %v599_v44, 8.0 }
  0x72   :  { %v180_v5 = vsel %vm177_vm10, %v179_v11, %v170_v1  ;;  %v183_v6 = vsel %vm177_vm10, %v182_v13, %v173_v2  ;;  %v186_v7 = vsel %vm177_vm10, %v185_v14, %v176_v3  ;;  %vm217_vm14 = vcmp.eq.f32.partialorder %v599_v44, 9.0 }
  0x73   :  { %v190_v8 = vsel %vm187_vm11, %v189_v15, %v180_v5  ;;  %v193_v9 = vsel %vm187_vm11, %v192_v16, %v183_v6  ;;  %v196_v10 = vsel %vm187_vm11, %v195_v17, %v186_v7  ;;  %vm227_vm15 = vcmp.eq.f32.partialorder %v599_v44, 10.0 }
  0x74   :  { %v200_v11 = vsel %vm197_vm12, %v199_v18, %v190_v8  ;;  %v203_v12 = vsel %vm197_vm12, %v202_v19, %v193_v9  ;;  %v206_v13 = vsel %vm197_vm12, %v205_v21, %v196_v10  ;;  %vm237_vm0 = vcmp.eq.f32.partialorder %v599_v44, 11.0 }
  0x75   :  { %v210_v14 = vsel %vm207_vm13, %v209_v22, %v200_v11  ;;  %v213_v15 = vsel %vm207_vm13, %v212_v23, %v203_v12  ;;  %v216_v16 = vsel %vm207_vm13, %v215_v26, %v206_v13  ;;  %vm247_vm1 = vcmp.eq.f32.partialorder %v599_v44, 12.0 }
  0x76   :  { %v220_v17 = vsel %vm217_vm14, %v219_v27, %v210_v14  ;;  %v223_v18 = vsel %vm217_vm14, %v222_v29, %v213_v15  ;;  %v226_v19 = vsel %vm217_vm14, %v225_v30, %v216_v16  ;;  %vm257_vm2 = vcmp.eq.f32.partialorder %v599_v44, 13.0 }
  0x77   :  { %v230_v20 = vsel %vm227_vm15, %v229_v31, %v220_v17  ;;  %v233_v21 = vsel %vm227_vm15, %v232_v32, %v223_v18  ;;  %v236_v22 = vsel %vm227_vm15, %v235_v33, %v226_v19  ;;  %vm267_vm3 = vcmp.eq.f32.partialorder %v599_v44, 14.0 }
  0x78   :  { %v240_v23 = vsel %vm237_vm0, %v239_v34, %v230_v20  ;;  %v243_v24 = vsel %vm237_vm0, %v242_v35, %v233_v21  ;;  %v246_v26 = vsel %vm237_vm0, %v245_v38, %v236_v22  ;;  %vm277_vm4 = vcmp.eq.f32.partialorder %v599_v44, 15.0 }
  0x79   :  { %v250_v27 = vsel %vm247_vm1, %v249_v39, %v240_v23  ;;  %v253_v28 = vsel %vm247_vm1, %v252_v40, %v243_v24  ;;  %v256_v29 = vsel %vm247_vm1, %v255_v41, %v246_v26  ;;  %v126_v30 = vsel %vm124_vm9, %v125_v25, %v123_v52 }
  0x7a   :  { %v260_v31 = vsel %vm257_vm2, %v259_v42, %v250_v27  ;;  %v263_v32 = vsel %vm257_vm2, %v262_v43, %v253_v28  ;;  %v266_v33 = vsel %vm257_vm2, %v265_v45, %v256_v29 }
  0x7b   :  { %v270_v34 = vsel %vm267_vm3, %v269_v46, %v260_v31  ;;  %v273_v35 = vsel %vm267_vm3, %v272_v47, %v263_v32  ;;  %v276_v36 = vsel %vm267_vm3, %v275_v48, %v266_v33 }
  0x7c   :  { %v280_v37 = vsel %vm277_vm4, %v279_v49, %v270_v34  ;;  %v283_v38 = vsel %vm277_vm4, %v282_v50, %v273_v35  ;;  %v286_v39 = vsel %vm277_vm4, %v285_v51, %v276_v36 }
  0x7d   :  { %v287_v53 = vmul.f32 %v280_v37, %v126_v30  ;;  %v289_v25 = vmul.f32 %v283_v38, %v126_v30  ;;  %v292_v40 = vmul.f32 %v286_v39, %v126_v30 }
  0x7f   :  { %288 = vst [vmem:[%s853_s30] sm:$0xff] %v287_v53  ;;  %357 = vst [vmem:[%s853_s30 + $0x8] sm:$0xff] %v289_v25 }
  0x80   :  { %358 = vst [vmem:[%s853_s30 + $0x10] sm:$0xff] %v292_v40 }
  0x81   :  { %299 = vsyncpa [#allocation3], 1 }
  0x82   :  { %300 = vsyncpa [#allocation5], 1 }

</bundles_post_ra>
